<compile_context>
chip_gen: v7x
topology: tpu7x:2x2x1
jax: 0.10.0
libtpu: 0.0.40
codegen_flags: <defaults>
</compile_context>

<pallas_src>
import functools

import jax
import jax.numpy as jnp
from jax.experimental import pallas as pl
from jax.experimental.pallas import tpu as pltpu


def _diffuse0_kernel(adj0_ref, x_ref, x1_ref):
    # x1[rows, :] = adj[0][rows, :] @ x   (f32 accumulation on the MXU)
    x1_ref[...] = jnp.dot(adj0_ref[...], x_ref[...],
                          preferred_element_type=jnp.float32)


def _core_diffusion_kernel(
    x1_tile_ref,    # [tm, D_in] md    rows of x1 for this tile
    x1_full_ref,    # [N, D_in]  md    full x1 (RHS of adj[1:3] @ x1)
    adj12_ref,      # [2, tm, N] md    row tiles of adj[1] and adj[2]
    wi_ref,         # [D_in, 3H] md    fused input->gate weights  (r|z|n)
    wh_ref,         # [H, 3H]    md    fused hidden->gate weights (r|z|n)
    bi_ref,         # [1, 3H]    f32   fused biases (b_ir+b_hr | b_iz+b_hz | b_in)
    bhn_ref,        # [1, H]     f32   hidden n-gate bias (stays inside r*(.))
    gamma_ref,      # [1, H]     f32   LayerNorm scale
    beta_ref,       # [1, H]     f32   LayerNorm shift
    out_ref,        # [tm, H]    f32
    *, num_steps,
):
    tm = x1_tile_ref.shape[0]
    H = out_ref.shape[1]
    md = wh_ref.dtype

    x1_full = x1_full_ref[...]                           # [N, D_in]  md
    n_nodes = adj12_ref.shape[-1]

    # --- remaining diffusion hops: [x2; x3] = [adj1; adj2] @ x1 (one MXU pass when aligned)
    if tm % 16 == 0:
        adjcat = adj12_ref[...].reshape(2 * tm, n_nodes)
        x23 = jnp.dot(adjcat, x1_full, preferred_element_type=jnp.float32)
        x2, x3 = x23[:tm], x23[tm:]
    else:
        x2 = jnp.dot(adj12_ref[0], x1_full, preferred_element_type=jnp.float32)
        x3 = jnp.dot(adj12_ref[1], x1_full, preferred_element_type=jnp.float32)

    # --- input-side GRU projections hoisted out of the recurrence
    # (only 3 distinct diffusion results exist; steps >= 2 all reuse x3, like the PyTorch module)
    relu1 = jnp.maximum(x1_tile_ref[...].astype(jnp.float32), 0.0)
    xt_all = jnp.concatenate(
        [relu1, jnp.maximum(x2, 0.0), jnp.maximum(x3, 0.0)],
        axis=0).astype(md)                               # [3*tm, D_in]
    gi_all = jnp.dot(xt_all, wi_ref[...],
                     preferred_element_type=jnp.float32) + bi_ref[...]   # [3*tm, 3H]
    gi_steps = (gi_all[0:tm], gi_all[tm:2 * tm], gi_all[2 * tm:3 * tm])

    wh = wh_ref[...]                                     # [H, 3H] md
    bhn = jnp.broadcast_to(bhn_ref[...], (tm, H))        # broadcast hoisted out of the loop

    # --- step 0: h == 0, so the hidden-side matmul vanishes
    gi = gi_steps[0]
    r = jax.nn.sigmoid(gi[:, 0:H])
    z = jax.nn.sigmoid(gi[:, H:2 * H])
    n = jnp.tanh(gi[:, 2 * H:3 * H] + r * bhn)
    h = (1.0 - z) * n
    acc = h

    # --- remaining steps: only the h-dependent [tm,H] @ [H,3H] matmul is serial
    for t in range(1, num_steps):
        gi = gi_steps[min(t, 2)]
        gh = jnp.dot(h.astype(md), wh, preferred_element_type=jnp.float32)   # [tm, 3H]
        r = jax.nn.sigmoid(gi[:, 0:H] + gh[:, 0:H])
        z = jax.nn.sigmoid(gi[:, H:2 * H] + gh[:, H:2 * H])
        n = jnp.tanh(gi[:, 2 * H:3 * H] + r * (gh[:, 2 * H:3 * H] + bhn))
        h = (1.0 - z) * n + z * h
        acc = acc + h

    # --- LayerNorm over features (eps = 1e-5, biased variance), f32
    mean = jnp.mean(acc, axis=-1, keepdims=True)
    cent = acc - mean
    var = jnp.mean(cent * cent, axis=-1, keepdims=True)
    normed = cent * jax.lax.rsqrt(var + 1e-5)
    out_ref[...] = (normed * gamma_ref[...] + beta_ref[...]).astype(out_ref.dtype)


def core_diffusion_pallas(adj, x, params, *, block_rows=256,
                          matmul_dtype=jnp.bfloat16):
    """adj: [T, N, N] f32 dense stand-in for the sparse adjacency list (only adj[0:3] used),
       x: [N, D_in] f32, params: GRU / LayerNorm parameters (see make_params)."""
    T, N, _ = adj.shape
    assert T >= 3, "CoreDiffusion reads adj[0], adj[1], adj[2]"
    D_in = x.shape[1]
    H = params["w_hr"].shape[0]
    md = matmul_dtype

    # Only the first three adjacency matrices are ever read by the module.
    adj0 = adj[0].astype(md)
    adj12 = adj[1:3].astype(md)

    # Fused GRU weights / biases (PyTorch gate order r, z, n; weights already pre-transposed).
    wi = jnp.concatenate([params["w_ir"], params["w_iz"], params["w_in"]], axis=1).astype(md)
    wh = jnp.concatenate([params["w_hr"], params["w_hz"], params["w_hn"]], axis=1).astype(md)
    bi = jnp.concatenate([params["b_ir"] + params["b_hr"],
                          params["b_iz"] + params["b_hz"],
                          params["b_in"]], axis=1).astype(jnp.float32)
    bhn = params["b_hn"].astype(jnp.float32)

    # Row tile: rows are independent once x1 is known.
    tm = min(block_rows, N)
    if tm < N:
        tm = max(8, (tm // 8) * 8)
    grid = (pl.cdiv(N, tm),)
    parallel = pltpu.CompilerParams(dimension_semantics=("parallel",))

    # Pass 1: x1 = adj[0] @ x  (the full x1 is consumed by every row tile of pass 2).
    x1 = pl.pallas_call(
        _diffuse0_kernel,
        out_shape=jax.ShapeDtypeStruct((N, D_in), jnp.float32),
        grid=grid,
        in_specs=[pl.BlockSpec((tm, N), lambda i: (i, 0)),
                  pl.BlockSpec((N, D_in), lambda i: (0, 0))],
        out_specs=pl.BlockSpec((tm, D_in), lambda i: (i, 0)),
        compiler_params=parallel,
    )(adj0, x.astype(md))

    x1_md = x1.astype(md)

    # Pass 2: stream adj[1:3] row tiles; fused GRU + time-sum + LayerNorm per tile.
    kernel = functools.partial(_core_diffusion_kernel, num_steps=T)
    out = pl.pallas_call(
        kernel,
        out_shape=jax.ShapeDtypeStruct((N, H), jnp.float32),
        grid=grid,
        in_specs=[
            pl.BlockSpec((tm, D_in), lambda i: (i, 0)),      # x1 rows for this tile
            pl.BlockSpec((N, D_in), lambda i: (0, 0)),       # x1 full (RHS, constant block)
            pl.BlockSpec((2, tm, N), lambda i: (0, i, 0)),   # adj[1:3] row tile
            pl.BlockSpec((D_in, 3 * H), lambda i: (0, 0)),   # Wi fused
            pl.BlockSpec((H, 3 * H), lambda i: (0, 0)),      # Wh fused
            pl.BlockSpec((1, 3 * H), lambda i: (0, 0)),      # fused biases
            pl.BlockSpec((1, H), lambda i: (0, 0)),          # b_hn
            pl.BlockSpec((1, H), lambda i: (0, 0)),          # LN gamma
            pl.BlockSpec((1, H), lambda i: (0, 0)),          # LN beta
        ],
        out_specs=pl.BlockSpec((tm, H), lambda i: (i, 0)),
        compiler_params=parallel,
    )(x1_md, x1_md, adj12, wi, wh, bi, bhn,
      params["ln_gamma"].astype(jnp.float32), params["ln_beta"].astype(jnp.float32))
    return out


def core_diffusion_ref(adj, x, params, matmul_dtype=jnp.float32):
    """Pure-JAX reference mirroring the PyTorch forward (optionally with bf16 matmul operands)."""
    md = matmul_dtype

    def mm(a, b):
        return jnp.dot(a.astype(md), b.astype(md),
                       preferred_element_type=jnp.float32,
                       precision=jax.lax.Precision.HIGHEST)

    T = adj.shape[0]
    cur = x
    x1 = x
    hx = []
    for i in range(T):
        if i == 0:
            cur = mm(adj[0], cur)
            x1 = cur
        elif i == 1:
            cur = mm(adj[1], cur)
        else:
            cur = mm(adj[2], x1)
        hx.append(jnp.maximum(cur, 0.0))

    N = x.shape[0]
    H = params["w_hr"].shape[0]
    h = jnp.zeros((N, H), jnp.float32)
    acc = jnp.zeros((N, H), jnp.float32)
    for xt in hx:
        r = jax.nn.sigmoid(mm(xt, params["w_ir"]) + params["b_ir"]
                           + mm(h, params["w_hr"]) + params["b_hr"])
        z = jax.nn.sigmoid(mm(xt, params["w_iz"]) + params["b_iz"]
                           + mm(h, params["w_hz"]) + params["b_hz"])
        n = jnp.tanh(mm(xt, params["w_in"]) + params["b_in"]
                     + r * (mm(h, params["w_hn"]) + params["b_hn"]))
        h = (1.0 - z) * n + z * h
        acc = acc + h
    mean = jnp.mean(acc, -1, keepdims=True)
    var = jnp.mean((acc - mean) ** 2, -1, keepdims=True)
    return (acc - mean) / jnp.sqrt(var + 1e-5) * params["ln_gamma"] + params["ln_beta"]


def make_params(key, input_dim, output_dim):
    """Deterministic synthetic init; GRU weights use PyTorch-style U(-1/sqrt(H), 1/sqrt(H))."""
    ks = jax.random.split(key, 12)
    bound = 1.0 / (output_dim ** 0.5)
    u = lambda k, shape: jax.random.uniform(k, shape, jnp.float32, -bound, bound)
    return {
        "w_ir": u(ks[0], (input_dim, output_dim)),
        "w_iz": u(ks[1], (input_dim, output_dim)),
        "w_in": u(ks[2], (input_dim, output_dim)),
        "w_hr": u(ks[3], (output_dim, output_dim)),
        "w_hz": u(ks[4], (output_dim, output_dim)),
        "w_hn": u(ks[5], (output_dim, output_dim)),
        "b_ir": u(ks[6], (1, output_dim)),
        "b_iz": u(ks[7], (1, output_dim)),
        "b_in": u(ks[8], (1, output_dim)),
        "b_hr": u(ks[9], (1, output_dim)),
        "b_hz": u(ks[10], (1, output_dim)),
        "b_hn": u(ks[11], (1, output_dim)),
        # nn.LayerNorm default affine init
        "ln_gamma": jnp.ones((1, output_dim), jnp.float32),
        "ln_beta": jnp.zeros((1, output_dim), jnp.float32),
    }


if __name__ == "__main__":
    # nodes, input_dim, output_dim, number of adjacency matrices (small, multi-tile grid)
    N, D_IN, H, T = 64, 8, 32, 3

    key = jax.random.PRNGKey(0)
    k_adj, k_x, k_p = jax.random.split(key, 3)

    # Dense stand-ins for the sparse adjacency matrices (row-normalized, non-negative).
    # TODO(synk): torch.sparse.mm has no sparse Pallas equivalent here; dense MXU matmuls used.
    adj_raw = jax.random.uniform(k_adj, (T, N, N), jnp.float32)
    adj = adj_raw / jnp.sum(adj_raw, axis=-1, keepdims=True)
    x = jax.random.normal(k_x, (N, D_IN), jnp.float32)
    params = make_params(k_p, D_IN, H)

    # Structural correctness check with f32 matmul operands (multi-tile grid: block_rows=32).
    out_f32 = jax.block_until_ready(
        core_diffusion_pallas(adj, x, params, block_rows=32, matmul_dtype=jnp.float32))
    ref_f32 = core_diffusion_ref(adj, x, params, matmul_dtype=jnp.float32)
    assert out_f32.shape == (N, H)
    err_f32 = float(jnp.max(jnp.abs(out_f32 - ref_f32)))
    assert jnp.allclose(out_f32, ref_f32, atol=1e-2, rtol=1e-2), (
        "f32 max abs err %g" % err_f32)

    # Production path: bf16 matmul operands (MXU), f32 gate / LayerNorm math.
    out_bf16 = jax.block_until_ready(
        core_diffusion_pallas(adj, x, params, block_rows=32, matmul_dtype=jnp.bfloat16))
    ref_bf16 = core_diffusion_ref(adj, x, params, matmul_dtype=jnp.bfloat16)
    err_bf16 = float(jnp.max(jnp.abs(out_bf16 - ref_bf16)))
    assert jnp.allclose(out_bf16, ref_bf16, atol=3e-2, rtol=3e-2), (
        "bf16 max abs err %g" % err_bf16)

    print("KERNEL_OK")
</pallas_src>

<mosaic_0001>
module attributes {stable_mosaic.version = 11 : i64} {
  func.func @_diffuse0_kernel(%arg0: i32, %arg1: memref<32x64xf32, #tpu.memory_space<vmem>>, %arg2: memref<64x8xf32, #tpu.memory_space<vmem>>, %arg3: memref<32x8xf32, #tpu.memory_space<vmem>>) attributes {dimension_semantics = [#tpu.dimension_semantics<parallel>], iteration_bounds = array<i64: 2>, scalar_prefetch = 0 : i64, scratch_operands = 0 : i64, tpu.core_type = #tpu.core_type<tc>, window_params = [{transform_indices = @transform_0, window_bounds = array<i64: 32, 64>}, {pipeline_mode = #tpu.pipeline_mode<synchronous>, transform_indices = @transform_1, window_bounds = array<i64: 64, 8>}, {transform_indices = @transform_2, window_bounds = array<i64: 32, 8>}]} {
    %c0 = arith.constant 0 : index
    %c0_0 = arith.constant 0 : index
    %0 = vector.load %arg1[%c0, %c0_0] : memref<32x64xf32, #tpu.memory_space<vmem>>, vector<32x64xf32>
    %c0_1 = arith.constant 0 : index
    %c0_2 = arith.constant 0 : index
    %1 = vector.load %arg2[%c0_1, %c0_2] : memref<64x8xf32, #tpu.memory_space<vmem>>, vector<64x8xf32>
    %cst = arith.constant dense<0.000000e+00> : vector<32x8xf32>
    %2 = tpu.matmul %0, %1, %cst {dimension_numbers = #tpu.dot_dimension_numbers<[1], [0], [0], [1], [0, 0, 1, 1], [], []>} : vector<32x64xf32>, vector<64x8xf32>, vector<32x8xf32> -> vector<32x8xf32>
    %c0_3 = arith.constant 0 : index
    %c0_4 = arith.constant 0 : index
    %3 = vector.load %arg3[%c0_3, %c0_4] : memref<32x8xf32, #tpu.memory_space<vmem>>, vector<32x8xf32>
    tpu.vector_store %arg3[%c0_3, %c0_4], %2 {strides = array<i32>} : memref<32x8xf32, #tpu.memory_space<vmem>>, vector<32x8xf32>,
    return
  }
  func.func @transform_0(%arg0: i32) -> (i32, i32) {
    %c0_i32 = arith.constant 0 : i32
    %c0_i32_0 = arith.constant 0 : i32
    return %arg0, %c0_i32 : i32, i32
  }
  func.func @transform_1(%arg0: i32) -> (i32, i32) {
    %c0_i32 = arith.constant 0 : i32
    %c0_i32_0 = arith.constant 0 : i32
    %c0_i32_1 = arith.constant 0 : i32
    return %c0_i32, %c0_i32_0 : i32, i32
  }
  func.func @transform_2(%arg0: i32) -> (i32, i32) {
    %c0_i32 = arith.constant 0 : i32
    %c0_i32_0 = arith.constant 0 : i32
    return %arg0, %c0_i32 : i32, i32
  }
}

</mosaic_0001>

<bundles_post_ra>
// kernel: tpu_custom_call.1
= control target key start
LH: loop header
LB: loop body
LE: loop exit
PB: predicated region body
PF: predicated region fallthrough
CT: control target
= control target key end

     0   :  { %s422_s9 = smov 0   ;;  %s470_s0 = inlined_call_operand.vmem [shape: f32[64,64], index: 0, kind: input, shape index: {}]   ;;  %s471_s1 = inlined_call_operand.vmem [shape: f32[64,8], index: 1, kind: input, shape index: {}]   ;;  %s472_s2 = inlined_call_operand.vmem [shape: f32[64,8], index: 2, kind: output, shape index: {}]  }
   0x1 LB: > { %s318_s10 = sadd.s32 4294967295, %s405_s9   ;;  %p322_p0 = scmp.ge.s32.totalorder %s405_s9, 1  ;;  %s405_s9 = sphi %s422_s9, %s12_s9  }
   0x2   : > { %p113_p1 = scmp.lt.s32.totalorder %s405_s9, 3 }
   0x4   : > { %p114_p2 = pnand %p322_p0, %p113_p1 }
   0x5   : > { %v151_v0 = vld [vmem:[%s471_s1] sm:$0xff] (!%p114_p2)  ;;  %v152_v1 = vld [vmem:[%s471_s1 + $0x8] sm:$0xff] (!%p114_p2)  ;;  %v153_v2 = vld [vmem:[%s471_s1 + $0x10] sm:$0xff] (!%p114_p2)  ;;  %s323_s17 = sshll.u32 (!%p114_p2), %s318_s10, 2  ;;  %vm159_vm0 = vcmask (!%p114_p2), 523264   ;;  %vm257_vm1 = vcmask (!%p114_p2), 64512  }
   0x6   : > { %117 = sbr.rel (%p114_p2) target bundleno = 239 (0xef), region = 28  ;;  %v367_v3 = vpack.c.bf16 (!%p114_p2), %v152_v1, %v151_v0  ;;  %v154_v4 = vld [vmem:[%s471_s1 + $0x18] sm:$0xff] (!%p114_p2)  ;;  %p136_p3 = scmp.lt.s32.totalorder (!%p114_p2), %s323_s17, 7  ;;  %v155_v6 = vld [vmem:[%s471_s1 + $0x20] sm:$0xff] (!%p114_p2)  ;;  %v156_v7 = vld [vmem:[%s471_s1 + $0x28] sm:$0xff] (!%p114_p2) }
   0x7   : > { %v371_v5 = vpack.c.bf16 (!%p114_p2), %v154_v4, %v153_v2  ;;  %v375_v8 = vpack.c.bf16 (!%p114_p2), %v156_v7, %v155_v6  ;;  %v157_v9 = vld [vmem:[%s471_s1 + $0x30] sm:$0xff] (!%p114_p2)  ;;  %v158_v10 = vld [vmem:[%s471_s1 + $0x38] sm:$0xff] (!%p114_p2) }
   0x8   : > { %368 = vmatprep.subr.bf16.mxu0 (!%p114_p2), %v367_v3  ;;  %383 = vmatprep.subr.bf16.mxu1 (!%p114_p2), %v367_v3  ;;  %v379_v13 = vpack.c.bf16 (!%p114_p2), %v158_v10, %v157_v9 }
   0x9   : > { %370 = vmatpush3.bf16.msra.mxu0 (!%p114_p2), %v367_v3  ;;  %387 = vmatpush3.bf16.msra.mxu1 (!%p114_p2), %v367_v3 }
   0xa   : > { %372 = vmatprep.subr.bf16.mxu0 (!%p114_p2), %v371_v5  ;;  %384 = vmatprep.subr.bf16.mxu1 (!%p114_p2), %v371_v5 }
   0xd   : > { %s474_s17 = smov (!%p136_p3, %s323_s17), 7  ;;  %374 = vmatpush3.bf16.msra.mxu0 %v371_v5  ;;  %388 = vmatpush3.bf16.msra.mxu1 %v371_v5 }
   0xe   : > { %s324_s24 = sshll.u32 %s474_s17, 3  ;;  %376 = vmatprep.subr.bf16.mxu0 %v375_v8  ;;  %385 = vmatprep.subr.bf16.mxu1 %v375_v8 }
   0xf   : > { %s139_s3 = scalar_lea.vmem %s470_s0, %s324_s24  ;;  %s145_s6 = scalar_lea.vmem %s472_s2, %s324_s24 }
  0x10   : > { %v147_v11 = vld [vmem:[%s139_s3] sm:$0xff]  ;;  %v149_v12 = vld [vmem:[%s139_s3 + $0x10] sm:$0xff]  ;;  %v148_v14 = vld [vmem:[%s139_s3 + $0x8] sm:$0xff] }
  0x11   : > { %361 = vmatprep.mubr.msk.f32.mxu0 %vm159_vm0, %v147_v11  ;;  %364 = vmatprep.mubr.msk.f32.mxu1 %vm159_vm0, %v149_v12  ;;  %v150_v15 = vld [vmem:[%s139_s3 + $0x18] sm:$0xff] }
  0x12   : > { %378 = vmatpush3.bf16.msra.mxu0 %v375_v8  ;;  %389 = vmatpush3.bf16.msra.mxu1 %v375_v8 }
  0x13   : > { %380 = vmatprep.subr.bf16.mxu0 %v379_v13  ;;  %386 = vmatprep.subr.bf16.mxu1 %v379_v13 }
  0x16   : > { %382 = vmatpush3.bf16.msra.mxu0 %v379_v13  ;;  %390 = vmatpush3.bf16.msra.mxu1 %v379_v13 }
  0x19   : > { %362 = vmatmul.mubr.msk.f32.vlgmr.msra.gmra.mrb[0].mxu0 %vm159_vm0, %v148_v14  ;;  %365 = vmatmul.mubr.msk.f32.vlgmr.msra.gmra.mrb[0].mxu1 %vm159_vm0, %v150_v15 }
  0xec   : > { %v363_v16 = vpop.f32.mrb[0].mxu0  ;;  %v366_v17 = vpop.f32.mrb[0].mxu1 }
  0xed   : > { %v238_v18 = vpop.f32.mrb[1].mxu0  ;;  %v248_v19 = vpop.f32.mrb[1].mxu1  ;;  %259 = vst.msk [vmem:[%s145_s6 + $0x8] sm:$0xff] %vm257_vm1, %v363_v16  ;;  %261 = vst.msk [vmem:[%s145_s6 + $0x18] sm:$0xff] %vm257_vm1, %v366_v17 }
  0xee   : > { %258 = vst.msk [vmem:[%s145_s6] sm:$0xff] %vm257_vm1, %v238_v18  ;;  %260 = vst.msk [vmem:[%s145_s6 + $0x10] sm:$0xff] %vm257_vm1, %v248_v19 }
  0xef PF: > { %s12_s9 = sadd.s32 1, %s405_s9  }
  0xf0   : > { %p9_p4 = scmp.ge.s32.totalorder %s12_s9, 4  }
  0xf2   :  { %11 = sbr.rel (!%p9_p4) target bundleno = 1 (0x1), region = 58 }

</bundles_post_ra>
